<compile_context>
chip_gen: v6e
topology: v6e:2x2x1
jax: 0.10.0
libtpu: 0.0.40
codegen_flags: <defaults>
</compile_context>

<pallas_src>
import math

import jax
import jax.numpy as jnp
from jax.experimental import pallas as pl
from jax.experimental.pallas import tpu as pltpu

_MIB = 1024 * 1024


def _round_up(x, m):
    return ((x + m - 1) // m) * m


# -----------------------------------------------------------------------------
# Pallas kernels
# -----------------------------------------------------------------------------
def _conv_matmul_kernel(p_ref, w_ref, b_ref, o_ref, acc_ref):
    """One (TM, TK) @ (TK, CP) MXU step; accumulate over the K grid axis."""
    k = pl.program_id(1)

    @pl.when(k == 0)
    def _():
        acc_ref[...] = jnp.zeros_like(acc_ref)

    acc_ref[...] += jnp.dot(p_ref[...], w_ref[...],
                            preferred_element_type=jnp.float32)

    @pl.when(k == pl.num_programs(1) - 1)
    def _():
        o_ref[...] = (acc_ref[...] + b_ref[...].astype(jnp.float32)
                      ).astype(o_ref.dtype)


def _avgpool_kernel(x_ref, o_ref):
    """x_ref block: (TR, 2, Wo, 2*C); o_ref block: (TR, Wo, C)."""
    c = o_ref.shape[-1]
    x = x_ref[...].astype(jnp.float32)      # (TR, 2, Wo, 2C)
    top = x[:, 0, :, :]                     # rows 2i     -> (TR, Wo, 2C)
    bot = x[:, 1, :, :]                     # rows 2i + 1
    s = top[..., :c] + top[..., c:] + bot[..., :c] + bot[..., c:]
    o_ref[...] = (0.25 * s).astype(o_ref.dtype)


# -----------------------------------------------------------------------------
# Wrappers
# -----------------------------------------------------------------------------
def downsample_conv(x_nchw, weight_oihw, bias):
    """Conv2d(C, Cout, kernel=3, stride=2, padding=1) via tiled Pallas matmul."""
    N, C, H, W = x_nchw.shape
    Cout = weight_oihw.shape[0]
    Ho = (H - 1) // 2 + 1
    Wo = (W - 1) // 2 + 1

    in_dt = x_nchw.dtype
    in_sz = jnp.dtype(in_dt).itemsize

    # NCHW -> NHWC, zero-pad spatial dims by 1 (XLA glue).
    x = jnp.transpose(x_nchw, (0, 2, 3, 1))
    x_pad = jnp.pad(x, ((0, 0), (1, 1), (1, 1), (0, 0)))

    # im2col: patches[(n,oh,ow), (kh,kw,ci)] = x_pad[n, 2oh+kh, 2ow+kw, ci]
    # TODO(synk): fuse patch extraction into the kernel DMA (overlapping /
    # Element index_map on x_pad) to avoid materializing this ~2.25x tensor.
    cols = [x_pad[:, kh:kh + 2 * Ho:2, kw:kw + 2 * Wo:2, :]
            for kh in range(3) for kw in range(3)]
    patches = jnp.stack(cols, axis=-2).reshape(N * Ho * Wo, 9 * C)
    M, K = patches.shape

    # Lane-dense output: pad Cout up to a multiple of 128.
    CP = _round_up(max(Cout, 128), 128)
    w_mat = jnp.transpose(weight_oihw, (2, 3, 1, 0)).reshape(K, Cout)
    w_mat = jnp.pad(w_mat, ((0, 0), (0, CP - Cout)))
    b_mat = jnp.pad(bias.reshape(1, Cout), ((0, 0), (0, CP - Cout)))
    w_sz = jnp.dtype(w_mat.dtype).itemsize

    # K (reduction) tiling: keep each weight tile small enough for VMEM
    # (matters on v7x's 64 MiB VMEM for large C).
    if K * CP * w_sz <= 8 * _MIB:
        TK, K_pad = K, K                       # full weight stays resident
    elif C % 128 == 0:
        TK, K_pad = C, K                       # 9 reduction steps, no padding
    else:
        TK = 1024
        K_pad = _round_up(K, TK)
        patches = jnp.pad(patches, ((0, 0), (0, K_pad - K)))
        w_mat = jnp.pad(w_mat, ((0, K_pad - K), (0, 0)))

    # M tiling: largest multiple-of-8 tile that fits the VMEM budget.
    def vmem_need(tm):
        return (2 * tm * TK * in_sz            # patches (double-buffered)
                + 2 * TK * CP * w_sz           # weight tile
                + 2 * CP * w_sz                # bias
                + 2 * tm * CP * in_sz          # output tile
                + tm * CP * 4)                 # f32 accumulator scratch

    TM = min(512, _round_up(M, 8))
    while TM > 8 and vmem_need(TM) > 32 * _MIB:
        TM = max(8, _round_up(TM // 2, 8))

    grid = (pl.cdiv(M, TM), K_pad // TK)
    vmem_limit = int(max(vmem_need(TM) + 8 * _MIB, 32 * _MIB))

    cost = pl.CostEstimate(
        flops=2 * M * K_pad * CP,
        transcendentals=0,
        bytes_accessed=int(M * K_pad * in_sz + K_pad * CP * w_sz
                           + M * CP * in_sz + CP * w_sz),
    )

    out_flat = pl.pallas_call(
        _conv_matmul_kernel,
        out_shape=jax.ShapeDtypeStruct((M, CP), in_dt),
        grid=grid,
        in_specs=[
            pl.BlockSpec((TM, TK), lambda i, k: (i, k)),
            pl.BlockSpec((TK, CP), lambda i, k: (k, 0)),
            pl.BlockSpec((1, CP), lambda i, k: (0, 0)),
        ],
        out_specs=pl.BlockSpec((TM, CP), lambda i, k: (i, 0)),
        scratch_shapes=[pltpu.VMEM((TM, CP), jnp.float32)],
        compiler_params=pltpu.CompilerParams(
            dimension_semantics=("parallel", "arbitrary"),
            vmem_limit_bytes=vmem_limit),
        cost_estimate=cost,
    )(patches, w_mat, b_mat)

    out = out_flat[:, :Cout].reshape(N, Ho, Wo, Cout)
    return jnp.transpose(out, (0, 3, 1, 2))            # back to NCHW


def downsample_avgpool(x_nchw):
    """AvgPool2d(kernel=2, stride=2), single-pass tiled Pallas kernel."""
    N, C, H, W = x_nchw.shape
    Ho, Wo = H // 2, W // 2
    dt = x_nchw.dtype
    sz = jnp.dtype(dt).itemsize

    x = jnp.transpose(x_nchw, (0, 2, 3, 1))            # NHWC (the only copy)
    x = x[:, :2 * Ho, :2 * Wo, :]                      # PyTorch floor behavior
    # Free contiguous reshape:
    #   x_r[n*Ho + i, p, j, q*C + c] = x[n, 2*i + p, 2*j + q, c]
    x_r = x.reshape(N * Ho, 2, Wo, 2 * C)

    R = N * Ho
    row_in = 2 * Wo * 2 * C * sz                       # input bytes per out row
    TR = max(1, min(R, (8 * _MIB) // max(1, row_in)))  # tile over output rows

    blk_in = TR * row_in
    blk_out = TR * Wo * C * sz
    vmem_limit = int(max(2 * (blk_in + blk_out) + 8 * _MIB, 32 * _MIB))

    cost = pl.CostEstimate(
        flops=4 * R * Wo * C,
        transcendentals=0,
        bytes_accessed=int(R * row_in + R * Wo * C * sz),
    )

    out = pl.pallas_call(
        _avgpool_kernel,
        out_shape=jax.ShapeDtypeStruct((R, Wo, C), dt),
        grid=(pl.cdiv(R, TR),),
        in_specs=[pl.BlockSpec((TR, 2, Wo, 2 * C), lambda i: (i, 0, 0, 0))],
        out_specs=pl.BlockSpec((TR, Wo, C), lambda i: (i, 0, 0)),
        compiler_params=pltpu.CompilerParams(
            dimension_semantics=("parallel",),
            vmem_limit_bytes=vmem_limit),
        cost_estimate=cost,
    )(x_r)

    out = out.reshape(N, Ho, Wo, C)
    return jnp.transpose(out, (0, 3, 1, 2))            # back to NCHW


def downsample(x_nchw, use_conv, weight=None, bias=None):
    if use_conv:
        return downsample_conv(x_nchw, weight, bias)
    return downsample_avgpool(x_nchw)


# -----------------------------------------------------------------------------
# Pure-JAX references (for correctness checking only)
# -----------------------------------------------------------------------------
def _ref_conv(x_nchw, weight_oihw, bias):
    out = jax.lax.conv_general_dilated(
        x_nchw, weight_oihw,
        window_strides=(2, 2),
        padding=((1, 1), (1, 1)),
        dimension_numbers=("NCHW", "OIHW", "NCHW"),
    )
    return out + bias.reshape(1, -1, 1, 1)


def _ref_avgpool(x_nchw):
    N, C, H, W = x_nchw.shape
    return x_nchw.reshape(N, C, H // 2, 2, W // 2, 2).mean(axis=(3, 5))


# -----------------------------------------------------------------------------
if __name__ == "__main__":
    key = jax.random.PRNGKey(0)
    k_x, k_w, k_b = jax.random.split(key, 3)

    N, C, H, W = 2, 4, 16, 16
    x = jax.random.normal(k_x, (N, C, H, W), dtype=jnp.float32)

    # Deterministic Conv2d(C, C, 3, 3) parameters (PyTorch-style uniform init).
    fan_in = C * 3 * 3
    bound = 1.0 / math.sqrt(fan_in)
    weight = jax.random.uniform(k_w, (C, C, 3, 3), jnp.float32, -bound, bound)
    bias = jax.random.uniform(k_b, (C,), jnp.float32, -bound, bound)

    # use_conv = True path
    y_conv = downsample(x, use_conv=True, weight=weight, bias=bias)
    jax.block_until_ready(y_conv)
    y_conv_ref = _ref_conv(x, weight, bias)
    assert y_conv.shape == (N, C, H // 2, W // 2)
    assert jnp.allclose(y_conv, y_conv_ref, rtol=1e-4, atol=1e-4), \
        float(jnp.max(jnp.abs(y_conv - y_conv_ref)))

    # use_conv = False path
    y_pool = downsample(x, use_conv=False)
    jax.block_until_ready(y_pool)
    y_pool_ref = _ref_avgpool(x)
    assert y_pool.shape == (N, C, H // 2, W // 2)
    assert jnp.allclose(y_pool, y_pool_ref, rtol=1e-5, atol=1e-5)

    print("KERNEL_OK")
</pallas_src>

<mosaic_0001>
module attributes {stable_mosaic.version = 11 : i64} {
  func.func @_conv_matmul_kernel(%arg0: i32, %arg1: i32, %arg2: memref<128x36xf32, #tpu.memory_space<vmem>>, %arg3: memref<36x128xf32, #tpu.memory_space<vmem>>, %arg4: memref<1x128xf32, #tpu.memory_space<vmem>>, %arg5: memref<128x128xf32, #tpu.memory_space<vmem>>, %arg6: memref<128x128xf32, #tpu.memory_space<vmem>>) attributes {dimension_semantics = [#tpu.dimension_semantics<parallel>, #tpu.dimension_semantics<arbitrary>], iteration_bounds = array<i64: 1, 1>, scalar_prefetch = 0 : i64, scratch_operands = 1 : i64, tpu.core_type = #tpu.core_type<tc>, window_params = [{transform_indices = @transform_0, window_bounds = array<i64: 128, 36>}, {transform_indices = @transform_1, window_bounds = array<i64: 36, 128>}, {pipeline_mode = #tpu.pipeline_mode<synchronous>, transform_indices = @transform_2, window_bounds = array<i64: 1, 128>}, {transform_indices = @transform_3, window_bounds = array<i64: 128, 128>}]} {
    %c0_i32 = arith.constant 0 : i32
    %0 = arith.cmpi eq, %arg1, %c0_i32 : i32
    %1 = arith.extui %0 : i1 to i32
    %c0_i32_0 = arith.constant 0 : i32
    %2 = arith.cmpi ne, %1, %c0_i32_0 : i32
    scf.if %2 {
      %cst_10 = arith.constant 0.000000e+00 : f32
      %12 = vector.broadcast %cst_10 : f32 to vector<128x128xf32>
      %c0_11 = arith.constant 0 : index
      %c0_12 = arith.constant 0 : index
      %13 = vector.load %arg6[%c0_11, %c0_12] : memref<128x128xf32, #tpu.memory_space<vmem>>, vector<128x128xf32>
      tpu.vector_store %arg6[%c0_11, %c0_12], %12 {strides = array<i32>} : memref<128x128xf32, #tpu.memory_space<vmem>>, vector<128x128xf32>,
    } else {
    }
    %c0 = arith.constant 0 : index
    %c0_1 = arith.constant 0 : index
    %3 = vector.load %arg6[%c0, %c0_1] : memref<128x128xf32, #tpu.memory_space<vmem>>, vector<128x128xf32>
    %c0_2 = arith.constant 0 : index
    %c0_3 = arith.constant 0 : index
    %4 = vector.load %arg2[%c0_2, %c0_3] : memref<128x36xf32, #tpu.memory_space<vmem>>, vector<128x36xf32>
    %c0_4 = arith.constant 0 : index
    %c0_5 = arith.constant 0 : index
    %5 = vector.load %arg3[%c0_4, %c0_5] : memref<36x128xf32, #tpu.memory_space<vmem>>, vector<36x128xf32>
    %cst = arith.constant dense<0.000000e+00> : vector<128x128xf32>
    %6 = tpu.matmul %4, %5, %cst {dimension_numbers = #tpu.dot_dimension_numbers<[1], [0], [0], [1], [0, 0, 1, 1], [], []>} : vector<128x36xf32>, vector<36x128xf32>, vector<128x128xf32> -> vector<128x128xf32>
    %7 = arith.addf %3, %6 : vector<128x128xf32>
    %c0_6 = arith.constant 0 : index
    %c0_7 = arith.constant 0 : index
    %8 = vector.load %arg6[%c0_6, %c0_7] : memref<128x128xf32, #tpu.memory_space<vmem>>, vector<128x128xf32>
    tpu.vector_store %arg6[%c0_6, %c0_7], %7 {strides = array<i32>} : memref<128x128xf32, #tpu.memory_space<vmem>>, vector<128x128xf32>,
    %c0_i32_8 = arith.constant 0 : i32
    %9 = arith.cmpi eq, %arg1, %c0_i32_8 : i32
    %10 = arith.extui %9 : i1 to i32
    %c0_i32_9 = arith.constant 0 : i32
    %11 = arith.cmpi ne, %10, %c0_i32_9 : i32
    scf.if %11 {
      %c0_10 = arith.constant 0 : index
      %c0_11 = arith.constant 0 : index
      %12 = vector.load %arg6[%c0_10, %c0_11] : memref<128x128xf32, #tpu.memory_space<vmem>>, vector<128x128xf32>
      %c0_12 = arith.constant 0 : index
      %c0_13 = arith.constant 0 : index
      %13 = vector.load %arg4[%c0_12, %c0_13] : memref<1x128xf32, #tpu.memory_space<vmem>>, vector<1x128xf32>
      %14 = vector.broadcast %13 : vector<1x128xf32> to vector<128x128xf32>
      %15 = arith.addf %12, %14 : vector<128x128xf32>
      %c0_14 = arith.constant 0 : index
      %c0_15 = arith.constant 0 : index
      %16 = vector.load %arg5[%c0_14, %c0_15] : memref<128x128xf32, #tpu.memory_space<vmem>>, vector<128x128xf32>
      tpu.vector_store %arg5[%c0_14, %c0_15], %15 {strides = array<i32>} : memref<128x128xf32, #tpu.memory_space<vmem>>, vector<128x128xf32>,
    } else {
    }
    return
  }
  func.func @transform_0(%arg0: i32, %arg1: i32) -> (i32, i32) {
    %c0_i32 = arith.constant 0 : i32
    return %arg0, %arg1 : i32, i32
  }
  func.func @transform_1(%arg0: i32, %arg1: i32) -> (i32, i32) {
    %c0_i32 = arith.constant 0 : i32
    %c0_i32_0 = arith.constant 0 : i32
    return %arg1, %c0_i32 : i32, i32
  }
  func.func @transform_2(%arg0: i32, %arg1: i32) -> (i32, i32) {
    %c0_i32 = arith.constant 0 : i32
    %c0_i32_0 = arith.constant 0 : i32
    %c0_i32_1 = arith.constant 0 : i32
    return %c0_i32, %c0_i32_0 : i32, i32
  }
  func.func @transform_3(%arg0: i32, %arg1: i32) -> (i32, i32) {
    %c0_i32 = arith.constant 0 : i32
    %c0_i32_0 = arith.constant 0 : i32
    return %arg0, %c0_i32 : i32, i32
  }
}

</mosaic_0001>

<bundles_post_ra>
// kernel: tpu_custom_call.1
= control target key start
LH: loop header
LB: loop body
LE: loop exit
PB: predicated region body
PF: predicated region fallthrough
CT: control target
= control target key end

     0   :  { %vm121_vm0 = vcmask 1043456   ;;  %s592_s0 = inlined_call_operand.vmem [shape: f32[128,36], index: 0, kind: input, shape index: {}]   ;;  %s593_s1 = inlined_call_operand.vmem [shape: f32[36,128], index: 1, kind: input, shape index: {}]   ;;  %s594_s2 = inlined_call_operand.vmem [shape: f32[1,128], index: 2, kind: input, shape index: {}]   ;;  %s595_s3 = inlined_call_operand.hbm [shape: f32[128,128], index: 3, kind: output, shape index: {}]  }
   0x1   :  { %v71_v0 = vld [vmem:[%s593_s1 + $0x20] sm:$0xf]  ;;  %v70_v1 = vld [vmem:[%s593_s1 + $0x18] sm:$0xff]  ;;  %v69_v2 = vld [vmem:[%s593_s1 + $0x10] sm:$0xff] }
   0x2   :  { %415 = vmatprep.subr.msk.mxu0 %vm121_vm0, %v71_v0  ;;  %449 = vmatprep.subr.msk.mxu1 %vm121_vm0, %v71_v0  ;;  %v68_v3 = vld [vmem:[%s593_s1 + $0x8] sm:$0xff]  ;;  %v67_v4 = vld [vmem:[%s593_s1] sm:$0xff] }
   0x3   :  { %416 = vmatpush3.msk.msra.mxu0 %vm121_vm0, %v71_v0  ;;  %454 = vmatpush3.msk.msra.mxu1 %vm121_vm0, %v71_v0 }
   0x4   :  { %417 = vmatprep.subr.mxu0 %v70_v1  ;;  %450 = vmatprep.subr.mxu1 %v70_v1 }
   0x5   :  { %418 = vmatpush3.msra.mxu0 %v70_v1  ;;  %455 = vmatpush3.msra.mxu1 %v70_v1 }
   0x6   :  { %419 = vmatprep.subr.mxu0 %v69_v2  ;;  %451 = vmatprep.subr.mxu1 %v69_v2 }
   0x7   :  { %420 = vmatpush3.msra.mxu0 %v69_v2  ;;  %456 = vmatpush3.msra.mxu1 %v69_v2 }
   0x8   :  { %421 = vmatprep.subr.mxu0 %v68_v3  ;;  %452 = vmatprep.subr.mxu1 %v68_v3 }
   0x9   :  { %8 = vsyncpa [#allocation4], 0  ;;  %422 = vmatpush3.msra.mxu0 %v68_v3  ;;  %457 = vmatpush3.msra.mxu1 %v68_v3  ;;  %v51_v5 = vld [vmem:[%s592_s0] sm:$0xff]  ;;  %vm72_vm1 = vcmask 293888   ;;  %v52_v7 = vld [vmem:[%s592_s0 + $0x8] sm:$0xff] }
   0xa   :  { %v59_v6 = vld [vmem:[%s592_s0 + $0x40] sm:$0xff]  ;;  %423 = vmatprep.subr.mxu0 %v67_v4  ;;  %453 = vmatprep.subr.mxu1 %v67_v4  ;;  %v60_v8 = vld [vmem:[%s592_s0 + $0x48] sm:$0xff]  ;;  %v53_v9 = vld [vmem:[%s592_s0 + $0x10] sm:$0xff] }
   0xb   :  { %424 = vmatpush3.msra.mxu0 %v67_v4  ;;  %458 = vmatpush3.msra.mxu1 %v67_v4  ;;  %v61_v10 = vld [vmem:[%s592_s0 + $0x50] sm:$0xff]  ;;  %v54_v11 = vld [vmem:[%s592_s0 + $0x18] sm:$0xff]  ;;  %v55_v13 = vld [vmem:[%s592_s0 + $0x20] sm:$0xff] }
   0xc   :  { %425 = vmatprep.mubr.msk.f32.mxu0 %vm72_vm1, %v51_v5  ;;  %437 = vmatprep.mubr.msk.f32.mxu1 %vm72_vm1, %v59_v6  ;;  %v62_v12 = vld [vmem:[%s592_s0 + $0x58] sm:$0xff]  ;;  %v63_v14 = vld [vmem:[%s592_s0 + $0x60] sm:$0xff]  ;;  %v56_v15 = vld [vmem:[%s592_s0 + $0x28] sm:$0xff] }
   0xd   :  { %426 = vmatmul.mubr.msk.f32.vlgmr.msra.gmra.mxu0 %vm72_vm1, %v52_v7  ;;  %438 = vmatmul.mubr.msk.f32.vlgmr.msra.gmra.mxu1 %vm72_vm1, %v60_v8  ;;  %v64_v16 = vld [vmem:[%s592_s0 + $0x68] sm:$0xff]  ;;  %v57_v17 = vld [vmem:[%s592_s0 + $0x30] sm:$0xff]  ;;  %v58_v19 = vld [vmem:[%s592_s0 + $0x38] sm:$0xff] }
   0xe   :  { %428 = vmatprep.mubr.msk.f32.mxu0 %vm72_vm1, %v53_v9  ;;  %440 = vmatprep.mubr.msk.f32.mxu1 %vm72_vm1, %v61_v10  ;;  %v65_v18 = vld [vmem:[%s592_s0 + $0x70] sm:$0xff]  ;;  %v66_v20 = vld [vmem:[%s592_s0 + $0x78] sm:$0xff]  ;;  %v393_v21 = vld [vmem:[%s594_s2] ss:$0 sm:$0xff]  ;;  %s484_s0 = smov [#allocation3]  }
   0xf   :  { %s365_s2 = sshll.u32 %s484_s0, 4  ;;  %s366_s2 = int_to_ptr.vmem [resolvable:$true] %s365_s2 }
  0x10   :  { %s462_s1 = scalar_lea.vmem %s366_s2, 2048  ;;  %p467_p1 = scmp.lt.s32.totalorder %s366_s2, %s366_s2 }
  0x11   :  { %429 = vmatmul.mubr.msk.f32.gmra.mxu0 %vm72_vm1, %v54_v11  ;;  %441 = vmatmul.mubr.msk.f32.gmra.mxu1 %vm72_vm1, %v62_v12  ;;  %p463_p0 = scmp.ne.s32.totalorder %s366_s2, %s462_s1  ;;  %p468_p2 = scmp.lt.s32.totalorder %s462_s1, %s462_s1 }
  0x12   :  { %431 = vmatprep.mubr.msk.f32.mxu0 %vm72_vm1, %v55_v13  ;;  %443 = vmatprep.mubr.msk.f32.mxu1 %vm72_vm1, %v63_v14 }
  0x13   :  { %p469_p3 = por %p468_p2, %p467_p1 }
  0x15   :  { %432 = vmatmul.mubr.msk.f32.gmra.mxu0 %vm72_vm1, %v56_v15  ;;  %444 = vmatmul.mubr.msk.f32.gmra.mxu1 %vm72_vm1, %v64_v16  ;;  %p470_p4 = pnand %p469_p3, %p463_p0 }
  0x16   :  { %434 = vmatprep.mubr.msk.f32.mxu0 %vm72_vm1, %v57_v17  ;;  %446 = vmatprep.mubr.msk.f32.mxu1 %vm72_vm1, %v65_v18 }
  0x19   :  { %435 = vmatmul.mubr.msk.f32.gmra.mxu0 %vm72_vm1, %v58_v19  ;;  %447 = vmatmul.mubr.msk.f32.gmra.mxu1 %vm72_vm1, %v66_v20 }
  0xcd   :  { %v427_v22 = vpop.f32.mrf.mxu0  ;;  %v439_v23 = vpop.f32.mrf.mxu1 }
  0xce   :  { %v329_v24 = vadd.f32 %v427_v22, %v393_v21  ;;  %v337_v25 = vadd.f32 %v439_v23, %v393_v21 }
  0xcf   :  { %v191_v26 = vpop.f32.mrf.mxu0  ;;  %v231_v27 = vpop.f32.mrf.mxu1 }
  0xd0   :  { %345 = vst [vmem:[#allocation3 + $0x8] sm:$0xff] %v329_v24  ;;  %353 = vst [vmem:[#allocation3 + $0x48] sm:$0xff] %v337_v25  ;;  %v328_v28 = vadd.f32 %v393_v21, %v191_v26  ;;  %v336_v29 = vadd.f32 %v393_v21, %v231_v27 }
  0xd1   :  { %v430_v30 = vpop.f32.mrf.mxu0  ;;  %v442_v31 = vpop.f32.mrf.mxu1 }
  0xd2   :  { %344 = vst [vmem:[#allocation3] sm:$0xff] %v328_v28  ;;  %352 = vst [vmem:[#allocation3 + $0x40] sm:$0xff] %v336_v29  ;;  %v331_v32 = vadd.f32 %v430_v30, %v393_v21  ;;  %v339_v33 = vadd.f32 %v442_v31, %v393_v21 }
  0xd3   :  { %v201_v34 = vpop.f32.mrf.mxu0  ;;  %v241_v35 = vpop.f32.mrf.mxu1 }
  0xd4   :  { %347 = vst [vmem:[#allocation3 + $0x18] sm:$0xff] %v331_v32  ;;  %355 = vst [vmem:[#allocation3 + $0x58] sm:$0xff] %v339_v33  ;;  %v330_v36 = vadd.f32 %v393_v21, %v201_v34  ;;  %v338_v37 = vadd.f32 %v393_v21, %v241_v35 }
  0xd5   :  { %v433_v38 = vpop.f32.mrf.mxu0  ;;  %v445_v39 = vpop.f32.mrf.mxu1 }
  0xd6   :  { %346 = vst [vmem:[#allocation3 + $0x10] sm:$0xff] %v330_v36  ;;  %354 = vst [vmem:[#allocation3 + $0x50] sm:$0xff] %v338_v37  ;;  %v333_v40 = vadd.f32 %v433_v38, %v393_v21  ;;  %v341_v41 = vadd.f32 %v445_v39, %v393_v21 }
  0xd7   :  { %v211_v42 = vpop.f32.mrf.mxu0  ;;  %v251_v43 = vpop.f32.mrf.mxu1 }
  0xd8   :  { %349 = vst [vmem:[#allocation3 + $0x28] sm:$0xff] %v333_v40  ;;  %357 = vst [vmem:[#allocation3 + $0x68] sm:$0xff] %v341_v41  ;;  %v332_v44 = vadd.f32 %v393_v21, %v211_v42  ;;  %v340_v45 = vadd.f32 %v393_v21, %v251_v43 }
  0xd9   :  { %v436_v46 = vpop.f32.mrf.mxu0  ;;  %v448_v47 = vpop.f32.mrf.mxu1 }
  0xda   :  { %348 = vst [vmem:[#allocation3 + $0x20] sm:$0xff] %v332_v44  ;;  %356 = vst [vmem:[#allocation3 + $0x60] sm:$0xff] %v340_v45  ;;  %v335_v48 = vadd.f32 %v436_v46, %v393_v21  ;;  %v343_v49 = vadd.f32 %v448_v47, %v393_v21 }
  0xdb   :  { %v221_v50 = vpop.f32.mrf.mxu0  ;;  %v261_v51 = vpop.f32.mrf.mxu1 }
  0xdc   :  { %351 = vst [vmem:[#allocation3 + $0x38] sm:$0xff] %v335_v48  ;;  %359 = vst [vmem:[#allocation3 + $0x78] sm:$0xff] %v343_v49  ;;  %v334_v52 = vadd.f32 %v393_v21, %v221_v50  ;;  %v342_v53 = vadd.f32 %v393_v21, %v261_v51 }
  0xde   :  { %350 = vst [vmem:[#allocation3 + $0x30] sm:$0xff] %v334_v52  ;;  %358 = vst [vmem:[#allocation3 + $0x70] sm:$0xff] %v342_v53 }
  0xdf   :  { %473 = shalt.err (!%p470_p4)
}
  0xe0   :  { %s485_s28 = smov 128   ;;  %s486_s29 = smov 8  }
  0xe1   :  { %371 = dma.vmem_to_hbm [thread:$0]  %s366_s2, 2048, %s595_s3, [#allocation4], %s485_s28, %s485_s28, %s486_s29  }
  0xe2   :  { %482 = dma.done.wait [#allocation4], 2048  }
  0xe3   :  { %483 = vsyncadd [#allocation4], 4294965248 }
  0xe4   :  { %375 = vsyncpa [#allocation4], 1 }

</bundles_post_ra>
